<compile_context>
chip_gen: v6e
topology: v6e:2x2x1
jax: 0.10.0
libtpu: 0.0.40
codegen_flags: <defaults>
</compile_context>

<pallas_src>
import jax
import jax.numpy as jnp
import numpy as np
from jax.experimental import pallas as pl
from jax.experimental.pallas import tpu as pltpu


def _round_up(n, m):
    return ((n + m - 1) // m) * m


def classification_net_kernel(x_ref, w0_ref, b0_ref, a0_ref,
                              w1_ref, b1_ref, ac_ref,
                              wf_ref, bf_ref, o_ref):
    # ---- embedding_net: Linear(D_in, H) -> PReLU(alpha0) -> Linear(H, 2) ----
    # Cast x to bf16 in-kernel (VPU work, hidden under the x DMA); accumulate in f32 on the MXU.
    x = x_ref[...].astype(jnp.bfloat16)                               # (TILE_B, D_in)
    h = jnp.dot(x, w0_ref[...], preferred_element_type=jnp.float32) + b0_ref[...]
    a0 = a0_ref[0]                                                    # SMEM scalar
    h = jnp.where(h >= 0, h, a0 * h)                                  # PReLU (shared alpha)
    emb = jnp.dot(h, w1_ref[...], preferred_element_type=jnp.float32) + b1_ref[...]  # (TILE_B, 2)

    # ---- ClassificationNet.nonlinear = nn.PReLU() (single shared alpha) ----
    ac = ac_ref[0]
    e = jnp.where(emb >= 0, emb, ac * emb)

    # ---- fc1: Linear(2, n_classes) as VPU broadcast-MAC (K=2 is too small for the MXU) ----
    # Padded class lanes carry bias = -1e30 -> exp() underflows to 0 in f32, so log_softmax
    # over the 128-lane padded logits is exact for the live classes.
    logits = (e[:, 0:1] * wf_ref[0:1, :]
              + e[:, 1:2] * wf_ref[1:2, :]
              + bf_ref[...])                                          # (TILE_B, N_PAD) f32
    m = jnp.max(logits, axis=-1, keepdims=True)
    lse = m + jnp.log(jnp.sum(jnp.exp(logits - m), axis=-1, keepdims=True))
    logp = logits - lse
    # Compact store: only the live class columns (block last dim == full output dim).
    o_ref[...] = logp[:, : o_ref.shape[-1]].astype(o_ref.dtype)


def prepare_params(params):
    """One-time parameter prep, hoisted out of the per-call forward path."""
    n_classes = params["wf"].shape[1]
    n_pad = _round_up(n_classes, 128)                                 # lane-dense logits slab
    wf_pad = jnp.zeros((2, n_pad), jnp.float32).at[:, :n_classes].set(
        params["wf"].astype(jnp.float32))
    bf_pad = jnp.full((1, n_pad), -1e30, jnp.float32).at[:, :n_classes].set(
        params["bf"].astype(jnp.float32))
    return {
        "w0": params["w0"].astype(jnp.bfloat16),
        "b0": params["b0"].astype(jnp.float32),
        "a0": params["a0"].astype(jnp.float32),
        "w1": params["w1"].astype(jnp.float32),
        "b1": params["b1"].astype(jnp.float32),
        "ac": params["ac"].astype(jnp.float32),
        "wf_pad": wf_pad,
        "bf_pad": bf_pad,
    }


def _choose_tile_b(B, bytes_per_row, tile_b_max):
    """Batch tile: as large as possible (amortize ~0.35us/step pipeline overhead), but
    (a) a multiple of 16, (b) double-buffered x tile well inside v7x's 64 MiB VMEM,
    (c) >= 2 grid steps for large B so the 'parallel' axis can use both v7x TensorCores."""
    if B <= 16:
        return B                                   # single block; block dims == full array dims
    # Keep 2 * (tile_b * row bytes) <= ~20 MiB, leaving room for f32 temporaries + out buffers.
    vmem_rows_cap = max(16, (20 * 1024 * 1024) // max(1, 2 * bytes_per_row))
    cap = min(tile_b_max, vmem_rows_cap, (B // 16) * 16)
    if B >= 32:
        cap = min(cap, _round_up(pl.cdiv(B, 2), 16))   # guarantee >= 2 grid steps (v7x 2 TCs)
    return max(16, (cap // 16) * 16)


def classification_net_forward(x_nchw, p, n_classes, tile_b_max=4096):
    B = x_nchw.shape[0]
    x_flat = x_nchw.reshape(B, -1)                 # contiguous reshape: no extra HBM pass
    d_in = x_flat.shape[1]

    tile_b = _choose_tile_b(B, d_in * x_flat.dtype.itemsize, tile_b_max)
    grid = (pl.cdiv(B, tile_b),)                   # ragged tail handled as a partial block

    def full(shape):  # whole-array block, constant index_map -> DMA'd once, stays resident
        return pl.BlockSpec(shape, lambda i: (0,) * len(shape))

    smem = pl.BlockSpec(memory_space=pltpu.MemorySpace.SMEM)

    out = pl.pallas_call(
        classification_net_kernel,
        out_shape=jax.ShapeDtypeStruct((B, n_classes), jnp.float32),  # compact, no slice pass
        grid=grid,
        in_specs=[
            pl.BlockSpec((tile_b, d_in), lambda i: (i, 0)),           # x (streamed, double-buffered)
            full(p["w0"].shape),                                      # w0 (resident, bf16)
            full(p["b0"].shape),                                      # b0
            smem,                                                     # PReLU alpha (embedding net)
            full(p["w1"].shape),                                      # w1
            full(p["b1"].shape),                                      # b1
            smem,                                                     # PReLU alpha (classifier)
            full(p["wf_pad"].shape),                                  # fc1 weight (padded to 128)
            full(p["bf_pad"].shape),                                  # fc1 bias   (padded to 128)
        ],
        out_specs=pl.BlockSpec((tile_b, n_classes), lambda i: (i, 0)),
        compiler_params=pltpu.CompilerParams(
            dimension_semantics=("parallel",),                        # shard batch across TCs (v7x)
            vmem_limit_bytes=48 * 1024 * 1024,                        # <= v7x 64 MiB; ample headroom
        ),
    )(x_flat, p["w0"], p["b0"], p["a0"],
      p["w1"], p["b1"], p["ac"],
      p["wf_pad"], p["bf_pad"])

    return out


def init_params(key, d_in, d_hidden, d_emb, n_classes):
    k0, k1, k2 = jax.random.split(key, 3)
    return {
        # embedding_net params
        "w0": jax.random.normal(k0, (d_in, d_hidden), jnp.float32) * 0.05,
        "b0": jnp.zeros((1, d_hidden), jnp.float32),
        "a0": jnp.full((1,), 0.25, jnp.float32),     # PReLU default init (PyTorch)
        "w1": jax.random.normal(k1, (d_hidden, d_emb), jnp.float32) * 0.1,
        "b1": jnp.zeros((1, d_emb), jnp.float32),
        # ClassificationNet params
        "ac": jnp.full((1,), 0.25, jnp.float32),     # self.nonlinear = nn.PReLU()
        "wf": jax.random.normal(k2, (d_emb, n_classes), jnp.float32) * 0.5,
        "bf": jnp.zeros((1, n_classes), jnp.float32),
    }


def reference_forward(x_nchw, p):
    # Mirrors the kernel's precision choices (bf16 x/w0, f32 accumulation, rest in f32).
    x = x_nchw.reshape(x_nchw.shape[0], -1).astype(jnp.bfloat16)
    w0 = p["w0"].astype(jnp.bfloat16)
    h = jnp.dot(x, w0, preferred_element_type=jnp.float32) + p["b0"]
    h = jnp.where(h >= 0, h, p["a0"][0] * h)
    emb = jnp.dot(h, p["w1"], preferred_element_type=jnp.float32) + p["b1"]
    e = jnp.where(emb >= 0, emb, p["ac"][0] * emb)
    logits = e @ p["wf"] + p["bf"]
    return jax.nn.log_softmax(logits, axis=-1)


if __name__ == "__main__":
    key = jax.random.PRNGKey(0)
    k_x, k_p, k_x2 = jax.random.split(key, 3)

    B, C, H, W = 2, 1, 16, 16          # NCHW, like the PyTorch module's conv-style input
    d_in = C * H * W                   # 256 after flatten (lane-aligned)
    d_hidden = 32
    d_emb = 2                          # fc1 = nn.Linear(2, n_classes) => embedding dim is 2
    n_classes = 10

    x = jax.random.normal(k_x, (B, C, H, W), jnp.float32)
    params = init_params(k_p, d_in, d_hidden, d_emb, n_classes)
    prepped = prepare_params(params)   # one-time prep, hoisted out of the forward path

    scores = jax.block_until_ready(classification_net_forward(x, prepped, n_classes))
    ref = jax.block_until_ready(reference_forward(x, params))
    np.testing.assert_allclose(np.asarray(scores), np.asarray(ref), rtol=2e-4, atol=2e-4)

    # Second check: a batch large enough to produce a 2-step grid (exercises the
    # "parallel" batch axis / multi-tile path that v7x uses to shard across its 2 TCs).
    B2 = 64
    x2 = jax.random.normal(k_x2, (B2, C, H, W), jnp.float32)
    scores2 = jax.block_until_ready(classification_net_forward(x2, prepped, n_classes))
    ref2 = jax.block_until_ready(reference_forward(x2, params))
    np.testing.assert_allclose(np.asarray(scores2), np.asarray(ref2), rtol=2e-4, atol=2e-4)

    print("KERNEL_OK")
</pallas_src>

<mosaic_0001>
module attributes {stable_mosaic.version = 11 : i64} {
  func.func @classification_net_kernel(%arg0: i32, %arg1: memref<2x256xf32, #tpu.memory_space<vmem>>, %arg2: memref<256x32xbf16, #tpu.memory_space<vmem>>, %arg3: memref<1x32xf32, #tpu.memory_space<vmem>>, %arg4: memref<1xf32, #tpu.memory_space<smem>>, %arg5: memref<32x2xf32, #tpu.memory_space<vmem>>, %arg6: memref<1x2xf32, #tpu.memory_space<vmem>>, %arg7: memref<1xf32, #tpu.memory_space<smem>>, %arg8: memref<2x128xf32, #tpu.memory_space<vmem>>, %arg9: memref<1x128xf32, #tpu.memory_space<vmem>>, %arg10: memref<2x10xf32, #tpu.memory_space<vmem>>) attributes {dimension_semantics = [#tpu.dimension_semantics<parallel>], iteration_bounds = array<i64: 1>, scalar_prefetch = 0 : i64, scratch_operands = 0 : i64, tpu.core_type = #tpu.core_type<tc>, window_params = [{transform_indices = @transform_0, window_bounds = array<i64: 2, 256>}, {pipeline_mode = #tpu.pipeline_mode<synchronous>, transform_indices = @transform_1, window_bounds = array<i64: 256, 32>}, {pipeline_mode = #tpu.pipeline_mode<synchronous>, transform_indices = @transform_2, window_bounds = array<i64: 1, 32>}, {transform_indices = @transform_3, window_bounds = array<i64: 1>}, {pipeline_mode = #tpu.pipeline_mode<synchronous>, transform_indices = @transform_4, window_bounds = array<i64: 32, 2>}, {pipeline_mode = #tpu.pipeline_mode<synchronous>, transform_indices = @transform_5, window_bounds = array<i64: 1, 2>}, {transform_indices = @transform_6, window_bounds = array<i64: 1>}, {pipeline_mode = #tpu.pipeline_mode<synchronous>, transform_indices = @transform_7, window_bounds = array<i64: 2, 128>}, {pipeline_mode = #tpu.pipeline_mode<synchronous>, transform_indices = @transform_8, window_bounds = array<i64: 1, 128>}, {transform_indices = @transform_9, window_bounds = array<i64: 2, 10>}]} {
    %c0 = arith.constant 0 : index
    %c0_0 = arith.constant 0 : index
    %0 = vector.load %arg1[%c0, %c0_0] : memref<2x256xf32, #tpu.memory_space<vmem>>, vector<2x256xf32>
    %1 = arith.truncf %0 : vector<2x256xf32> to vector<2x256xbf16>
    %c0_1 = arith.constant 0 : index
    %c0_2 = arith.constant 0 : index
    %2 = vector.load %arg2[%c0_1, %c0_2] : memref<256x32xbf16, #tpu.memory_space<vmem>>, vector<256x32xbf16>
    %cst = arith.constant dense<0.000000e+00> : vector<2x32xf32>
    %3 = tpu.matmul %1, %2, %cst {dimension_numbers = #tpu.dot_dimension_numbers<[1], [0], [0], [1], [0, 0, 1, 1], [], []>} : vector<2x256xbf16>, vector<256x32xbf16>, vector<2x32xf32> -> vector<2x32xf32>
    %c0_3 = arith.constant 0 : index
    %c0_4 = arith.constant 0 : index
    %4 = vector.load %arg3[%c0_3, %c0_4] : memref<1x32xf32, #tpu.memory_space<vmem>>, vector<1x32xf32>
    %5 = vector.broadcast %4 : vector<1x32xf32> to vector<2x32xf32>
    %6 = arith.addf %3, %5 : vector<2x32xf32>
    %c0_5 = arith.constant 0 : index
    %7 = memref.load %arg4[%c0_5] : memref<1xf32, #tpu.memory_space<smem>>
    %cst_6 = arith.constant 0.000000e+00 : f32
    %8 = vector.broadcast %cst_6 : f32 to vector<2x32xf32>
    %9 = arith.cmpf oge, %6, %8 : vector<2x32xf32>
    %10 = vector.broadcast %7 : f32 to vector<2x32xf32>
    %11 = arith.mulf %10, %6 : vector<2x32xf32>
    %12 = arith.select %9, %6, %11 : vector<2x32xi1>, vector<2x32xf32>
    %c0_7 = arith.constant 0 : index
    %c0_8 = arith.constant 0 : index
    %13 = vector.load %arg5[%c0_7, %c0_8] : memref<32x2xf32, #tpu.memory_space<vmem>>, vector<32x2xf32>
    %cst_9 = arith.constant dense<0.000000e+00> : vector<2x2xf32>
    %14 = tpu.matmul %12, %13, %cst_9 {dimension_numbers = #tpu.dot_dimension_numbers<[1], [0], [0], [1], [0, 0, 1, 1], [], []>} : vector<2x32xf32>, vector<32x2xf32>, vector<2x2xf32> -> vector<2x2xf32>
    %c0_10 = arith.constant 0 : index
    %c0_11 = arith.constant 0 : index
    %15 = vector.load %arg6[%c0_10, %c0_11] : memref<1x2xf32, #tpu.memory_space<vmem>>, vector<1x2xf32>
    %16 = vector.broadcast %15 : vector<1x2xf32> to vector<2x2xf32>
    %17 = arith.addf %14, %16 : vector<2x2xf32>
    %c0_12 = arith.constant 0 : index
    %18 = memref.load %arg7[%c0_12] : memref<1xf32, #tpu.memory_space<smem>>
    %cst_13 = arith.constant 0.000000e+00 : f32
    %19 = vector.broadcast %cst_13 : f32 to vector<2x2xf32>
    %20 = arith.cmpf oge, %17, %19 : vector<2x2xf32>
    %21 = vector.broadcast %18 : f32 to vector<2x2xf32>
    %22 = arith.mulf %21, %17 : vector<2x2xf32>
    %23 = arith.select %20, %17, %22 : vector<2x2xi1>, vector<2x2xf32>
    %24 = vector.extract_strided_slice %23 {offsets = [0, 0], sizes = [2, 1], strides = [1, 1]} : vector<2x2xf32> to vector<2x1xf32>
    %c0_14 = arith.constant 0 : index
    %c0_15 = arith.constant 0 : index
    %25 = vector.load %arg8[%c0_14, %c0_15] : memref<2x128xf32, #tpu.memory_space<vmem>>, vector<1x128xf32>
    %26 = vector.broadcast %24 : vector<2x1xf32> to vector<2x128xf32>
    %27 = vector.broadcast %25 : vector<1x128xf32> to vector<2x128xf32>
    %28 = arith.mulf %26, %27 : vector<2x128xf32>
    %29 = vector.extract_strided_slice %23 {offsets = [0, 1], sizes = [2, 1], strides = [1, 1]} : vector<2x2xf32> to vector<2x1xf32>
    %c1 = arith.constant 1 : index
    %c0_16 = arith.constant 0 : index
    %30 = vector.load %arg8[%c1, %c0_16] : memref<2x128xf32, #tpu.memory_space<vmem>>, vector<1x128xf32>
    %31 = vector.broadcast %29 : vector<2x1xf32> to vector<2x128xf32>
    %32 = vector.broadcast %30 : vector<1x128xf32> to vector<2x128xf32>
    %33 = arith.mulf %31, %32 : vector<2x128xf32>
    %34 = arith.addf %28, %33 : vector<2x128xf32>
    %c0_17 = arith.constant 0 : index
    %c0_18 = arith.constant 0 : index
    %35 = vector.load %arg9[%c0_17, %c0_18] : memref<1x128xf32, #tpu.memory_space<vmem>>, vector<1x128xf32>
    %36 = vector.broadcast %35 : vector<1x128xf32> to vector<2x128xf32>
    %37 = arith.addf %34, %36 : vector<2x128xf32>
    %cst_19 = arith.constant dense<0xFF800000> : vector<2xf32>
    %38 = vector.multi_reduction <maximumf>, %37, %cst_19 [1] : vector<2x128xf32> to vector<2xf32>
    %39 = vector.shape_cast %38 : vector<2xf32> to vector<2x1xf32>
    %40 = vector.broadcast %39 : vector<2x1xf32> to vector<2x128xf32>
    %41 = arith.subf %37, %40 : vector<2x128xf32>
    %42 = math.exp %41 : vector<2x128xf32>
    %cst_20 = arith.constant dense<0.000000e+00> : vector<2xf32>
    %43 = vector.multi_reduction <add>, %42, %cst_20 [1] : vector<2x128xf32> to vector<2xf32>
    %44 = vector.shape_cast %43 : vector<2xf32> to vector<2x1xf32>
    %45 = math.log %44 : vector<2x1xf32>
    %46 = arith.addf %39, %45 : vector<2x1xf32>
    %47 = vector.broadcast %46 : vector<2x1xf32> to vector<2x128xf32>
    %48 = arith.subf %37, %47 : vector<2x128xf32>
    %49 = vector.extract_strided_slice %48 {offsets = [0, 0], sizes = [2, 10], strides = [1, 1]} : vector<2x128xf32> to vector<2x10xf32>
    %c0_21 = arith.constant 0 : index
    %c0_22 = arith.constant 0 : index
    %50 = vector.load %arg10[%c0_21, %c0_22] : memref<2x10xf32, #tpu.memory_space<vmem>>, vector<2x10xf32>
    tpu.vector_store %arg10[%c0_21, %c0_22], %49 {strides = array<i32>} : memref<2x10xf32, #tpu.memory_space<vmem>>, vector<2x10xf32>,
    return
  }
  func.func @transform_0(%arg0: i32) -> (i32, i32) {
    %c0_i32 = arith.constant 0 : i32
    %c0_i32_0 = arith.constant 0 : i32
    return %arg0, %c0_i32 : i32, i32
  }
  func.func @transform_1(%arg0: i32) -> (i32, i32) {
    %c0_i32 = arith.constant 0 : i32
    %c0_i32_0 = arith.constant 0 : i32
    %c0_i32_1 = arith.constant 0 : i32
    return %c0_i32, %c0_i32_0 : i32, i32
  }
  func.func @transform_2(%arg0: i32) -> (i32, i32) {
    %c0_i32 = arith.constant 0 : i32
    %c0_i32_0 = arith.constant 0 : i32
    %c0_i32_1 = arith.constant 0 : i32
    return %c0_i32, %c0_i32_0 : i32, i32
  }
  func.func @transform_3(%arg0: i32) -> i32 {
    %c0_i32 = arith.constant 0 : i32
    %c0_i32_0 = arith.constant 0 : i32
    return %c0_i32 : i32
  }
  func.func @transform_4(%arg0: i32) -> (i32, i32) {
    %c0_i32 = arith.constant 0 : i32
    %c0_i32_0 = arith.constant 0 : i32
    %c0_i32_1 = arith.constant 0 : i32
    return %c0_i32, %c0_i32_0 : i32, i32
  }
  func.func @transform_5(%arg0: i32) -> (i32, i32) {
    %c0_i32 = arith.constant 0 : i32
    %c0_i32_0 = arith.constant 0 : i32
    %c0_i32_1 = arith.constant 0 : i32
    return %c0_i32, %c0_i32_0 : i32, i32
  }
  func.func @transform_6(%arg0: i32) -> i32 {
    %c0_i32 = arith.constant 0 : i32
    %c0_i32_0 = arith.constant 0 : i32
    return %c0_i32 : i32
  }
  func.func @transform_7(%arg0: i32) -> (i32, i32) {
    %c0_i32 = arith.constant 0 : i32
    %c0_i32_0 = arith.constant 0 : i32
    %c0_i32_1 = arith.constant 0 : i32
    return %c0_i32, %c0_i32_0 : i32, i32
  }
  func.func @transform_8(%arg0: i32) -> (i32, i32) {
    %c0_i32 = arith.constant 0 : i32
    %c0_i32_0 = arith.constant 0 : i32
    %c0_i32_1 = arith.constant 0 : i32
    return %c0_i32, %c0_i32_0 : i32, i32
  }
  func.func @transform_9(%arg0: i32) -> (i32, i32) {
    %c0_i32 = arith.constant 0 : i32
    %c0_i32_0 = arith.constant 0 : i32
    return %arg0, %c0_i32 : i32, i32
  }
}

</mosaic_0001>

<bundles_post_ra>
// kernel: tpu_custom_call.1
= control target key start
LH: loop header
LB: loop body
LE: loop exit
PB: predicated region body
PF: predicated region fallthrough
CT: control target
= control target key end

     0   :  { %s632_s0 = inlined_call_operand.vmem [shape: f32[2,256], index: 0, kind: input, shape index: {}]   ;;  %s633_s1 = inlined_call_operand.vmem [shape: bf16[256,32], index: 1, kind: input, shape index: {}]   ;;  %s634_s2 = inlined_call_operand.vmem [shape: f32[1,32], index: 2, kind: input, shape index: {}]   ;;  %s635_s3 = inlined_call_operand.<no memory space> [shape: f32[1], index: 3, kind: input, shape index: {}]   ;;  %s636_s4 = inlined_call_operand.vmem [shape: f32[32,2], index: 4, kind: input, shape index: {}]   ;;  %s637_s5 = inlined_call_operand.vmem [shape: f32[1,2], index: 5, kind: input, shape index: {}]   ;;  %s638_s6 = inlined_call_operand.<no memory space> [shape: f32[1], index: 6, kind: input, shape index: {}]   ;;  %s639_s7 = inlined_call_operand.vmem [shape: f32[2,128], index: 7, kind: input, shape index: {}]   ;;  %s640_s8 = inlined_call_operand.vmem [shape: f32[1,128], index: 8, kind: input, shape index: {}]   ;;  %s641_s9 = inlined_call_operand.hbm [shape: f32[2,10], index: 9, kind: output, shape index: {}]  }
   0x1   :  { %v448_v0 = vld [vmem:[%s633_s1 + $0x78] sm:$0xff]   ;;  %v450_v2 = vld [vmem:[%s633_s1 + $0x70] sm:$0xff]   ;;  %v452_v4 = vld [vmem:[%s633_s1 + $0x68] sm:$0xff]  }
   0x2   :  { %v449_v1 = vld [vmem:[%s633_s1 + $0x38] sm:$0xff]   ;;  %403 = vmatprep.subr.bf16.mxu0 %v448_v0  ;;  %v451_v3 = vld [vmem:[%s633_s1 + $0x30] sm:$0xff]   ;;  %v453_v5 = vld [vmem:[%s633_s1 + $0x28] sm:$0xff]  }
   0x3   :  { %404 = vmatpush3.bf16.msra.mxu0 %v449_v1  ;;  %v454_v6 = vld [vmem:[%s633_s1 + $0x60] sm:$0xff]   ;;  %v456_v8 = vld [vmem:[%s633_s1 + $0x58] sm:$0xff]   ;;  %v458_v10 = vld [vmem:[%s633_s1 + $0x50] sm:$0xff]  }
   0x4   :  { %405 = vmatprep.subr.bf16.mxu0 %v450_v2  ;;  %v455_v7 = vld [vmem:[%s633_s1 + $0x20] sm:$0xff]   ;;  %v457_v9 = vld [vmem:[%s633_s1 + $0x18] sm:$0xff]  }
   0x5   :  { %v380_v11 = vld.sshfl [vmem:[%s632_s0] sm:$0x33 pattern:$0x76325410] }
   0x7   :  { %406 = vmatpush3.bf16.msra.mxu0 %v451_v3 }
   0x8   :  { %407 = vmatprep.subr.bf16.mxu0 %v452_v4 }
   0xb   :  { %408 = vmatpush3.bf16.msra.mxu0 %v453_v5 }
   0xc   :  { %409 = vmatprep.subr.bf16.mxu0 %v454_v6 }
   0xf   :  { %410 = vmatpush3.bf16.msra.mxu0 %v455_v7 }
  0x10   :  { %411 = vmatprep.subr.bf16.mxu0 %v456_v8 }
  0x11   :  { %16 = vsyncpa [#allocation5], 0  ;;  %v45_v12 = vcombine.high %v380_v11, %v380_v11  ;;  %v459_v13 = vld [vmem:[%s633_s1 + $0x10] sm:$0xff]   ;;  %v460_v15 = vld [vmem:[%s633_s1 + $0x48] sm:$0xff]   ;;  %v48_v19 = vpack.c.bf16 %v380_v11, %v380_v11  ;;  %v490_v20 = vmov 0.0   ;;  %vm491_vm0 = vmmov 0  }
  0x12   :  { %v461_v16 = vld [vmem:[%s633_s1 + $0x8] sm:$0xff]   ;;  %v462_v17 = vld [vmem:[%s633_s1 + $0x40] sm:$0xff]   ;;  %430 = vmatprep.subr.mxu1 %v490_v20  ;;  %v233_v21 = vld [vmem:[%s636_s4 + $0x18] sm:$0xff]  ;;  %438 = vmatprep.mubr.msk.f32.mxu1 %vm491_vm0, %v490_v20  ;;  %v227_v29 = vstv %s635_s3  ;;  %vm241_vm2 = vcmask 261120   ;;  %v492_v35 = vmov 0   ;;  %v493_v43 = vmov 1  }
  0x13   :  { %412 = vmatpush3.bf16.msra.mxu0 %v457_v9  ;;  %v49_v14 = vpack.c.bf16 %v45_v12, %v45_v12  ;;  %v463_v18 = vld [vmem:[%s633_s1] sm:$0xff]   ;;  %431 = vmatpush3.msra.mxu1 %v233_v21  ;;  %v232_v22 = vld [vmem:[%s636_s4 + $0x10] sm:$0xff]  ;;  %v231_v23 = vld [vmem:[%s636_s4 + $0x8] sm:$0xff]  ;;  %v317_v38 = vstv %s638_s6  ;;  %vm350_vm4 = vcmask 1041408   ;;  %vm364_vm5 = vcmask 74752  }
  0x14   :  { %413 = vmatprep.subr.bf16.mxu0 %v458_v10  ;;  %432 = vmatprep.subr.mxu1 %v490_v20  ;;  %v230_v24 = vld [vmem:[%s636_s4] sm:$0xff] }
  0x15   :  { %217 = vmatprep.mubr.bf16.mxu0 %v49_v14  ;;  %433 = vmatpush3.msra.mxu1 %v232_v22  ;;  %v381_v26 = vld [vmem:[%s634_s2] ss:$0 sm:$0xff]  ;;  %v401_v46 = vld [vmem:[%s639_s7 + $0x1] ss:$0 sm:$0xff] }
  0x16   :  { %434 = vmatprep.subr.mxu1 %v490_v20  ;;  %446 = vset.pattern.permute.xlu0 %v492_v35  ;;  %v398_v36 = vld [vmem:[%s637_s5] ss:$0 sm:$0xff] }
  0x17   :  { %414 = vmatpush3.bf16.msra.mxu0 %v459_v13  ;;  %435 = vmatpush3.msra.mxu1 %v231_v23  ;;  %v400_v45 = vld [vmem:[%s639_s7] ss:$0 sm:$0xff]  ;;  %s494_s7 = smov [#allocation4]  }
  0x18   :  { %415 = vmatprep.subr.bf16.mxu0 %v460_v15  ;;  %436 = vmatprep.subr.mxu1 %v490_v20  ;;  %v402_v50 = vld [vmem:[%s640_s8] ss:$0 sm:$0xff]  ;;  %s372_s16 = sshll.u32 %s494_s7, 4  ;;  %s373_s16 = int_to_ptr.vmem [resolvable:$true] %s372_s16 }
  0x19   :  { %437 = vmatpush3.msra.mxu1 %v230_v24  ;;  %s468_s8 = scalar_lea.vmem %s373_s16, 32  ;;  %p473_p1 = scmp.lt.s32.totalorder %s373_s16, %s373_s16 }
  0x1a   :  { %p469_p0 = scmp.ne.s32.totalorder %s373_s16, %s468_s8  ;;  %p474_p2 = scmp.lt.s32.totalorder %s468_s8, %s468_s8 }
  0x1b   :  { %416 = vmatpush3.bf16.msra.mxu0 %v461_v16 }
  0x1c   :  { %417 = vmatprep.subr.bf16.mxu0 %v462_v17  ;;  %p475_p3 = por %p474_p2, %p473_p1 }
  0x1e   :  { %p476_p4 = pnand %p475_p3, %p469_p0 }
  0x1f   :  { %418 = vmatpush3.bf16.msra.mxu0 %v463_v18 }
  0x22   :  { %218 = vmatmul.mubr.bf16.vlgmr.msra.gmra.mxu0 %v48_v19 }
  0xe2   :  { %v419_v25 = vpop.f32.mrf.mxu0 }
  0xe4   :  { %v420_v27 = vpop.f32.mrf.mxu0 }
  0xe5   :  { %v421_v28 = vadd.f32 %v420_v27, %v419_v25 }
  0xe6   :  { %v422_v30 = vpop.f32.mrf.mxu0 }
  0xe7   :  { %v220_v31 = vadd.f32 %v421_v28, %v381_v26 }
  0xe8   :  { %v423_v32 = vpop.f32.mrf.mxu0 }
  0xe9   :  { %v228_v33 = vmul.f32 %v227_v29, %v220_v31  ;;  %vm226_vm1 = vcmp.ge.f32.partialorder %v220_v31, 0.0 }
  0xeb   :  { %v229_v34 = vsel %vm226_vm1, %v220_v31, %v228_v33 }
  0xec   :  { %439 = vmatmul.mubr.msk.f32.vlgmr.msra.gmra.mxu1 %vm241_vm2, %v229_v34 }
 0x1ac   :  { %v311_v37 = vpop.f32.mrf.mxu1 }
 0x1ad   :  { %v312_v39 = vadd.f32 %v398_v36, %v311_v37 }
 0x1ae   :  { %v440_v40 = vpop.f32.mrf.mxu1 }
 0x1af   :  { %vm316_vm3 = vcmp.ge.f32.partialorder %v312_v39, 0.0  ;;  %v318_v41 = vmul.f32 %v317_v38, %v312_v39 }
 0x1b1   :  { %v319_v42 = vsel %vm316_vm3, %v312_v39, %v318_v41 }
 0x1b2   :  { %323 = vperm.xlu0 %446, %v319_v42  }
 0x1b6   :  { %447 = vset.pattern.permute.xlu0 %v493_v43 }
 0x1b7   :  { %333 = vperm.xlu0 %447, %v319_v42  }
 0x22d   :  { %v324_v44 = vpop.permute.xlu0 %323 }
 0x22e   :  { %v330_v48 = vmul.f32 %v400_v45, %v324_v44 }
 0x232   :  { %v334_v47 = vpop.permute.xlu0 %333 }
 0x233   :  { %v340_v49 = vmul.f32 %v401_v46, %v334_v47 }
 0x235   :  { %v341_v51 = vadd.f32 %v340_v49, %v330_v48 }
 0x237   :  { %v349_v52 = vadd.f32 %v402_v50, %v341_v51 }
 0x239   :  { %v351_v53 = vsel %vm350_vm4, %v349_v52, -inf }
 0x23a   :  { %352 = vmax.xlane.f32.xlu1 %v351_v53 }
 0x2c3   :  { %v353_v54 = vpop.xlane.xlu1 %352 }
 0x2c4   :  { %v354_v55 = vsub.f32 %v349_v52, %v353_v54 }
 0x2c6   :  { %v355_v56 = vmul.f32 1.442695, %v354_v55 }
 0x2c8   :  { %464 = vpow2.f32 %v355_v56 }
 0x2d5   :  { %v465_v57 = vpop.eup %464 }
 0x2d6   :  { %v357_v58 = vsel %vm350_vm4, %v465_v57, 0.0 }
 0x2d7   :  { %358 = vadd.xlane.f32.xlu1 %v357_v58 }
 0x360   :  { %v359_v59 = vpop.xlane.xlu1 %358 }
 0x361   :  { %466 = vlog2.f32 %v359_v59 }
 0x36e   :  { %v467_v60 = vpop.eup %466 }
 0x36f   :  { %v361_v61 = vmul.f32 0.6931472, %v467_v60 }
 0x371   :  { %v362_v62 = vadd.f32 %v361_v61, %v353_v54 }
 0x373   :  { %v363_v63 = vsub.f32 %v349_v52, %v362_v62 }
 0x375   :  { %365 = vst.msk [vmem:[#allocation4] sm:$0x3] %vm364_vm5, %v363_v63 }
 0x376   :  { %479 = shalt.err (!%p476_p4)
}
 0x377   :  { %375 = dma.vmem_to_hbm [thread:$0]  %s373_s16, 32, %s641_s9, [#allocation5]  }
 0x378   :  { %488 = dma.done.wait [#allocation5], 32  }
 0x379   :  { %489 = vsyncadd [#allocation5], 4294967264 }
 0x37a   :  { %379 = vsyncpa [#allocation5], 1 }

</bundles_post_ra>
